<compile_context>
chip_gen: v5e
topology: v5e:2x2
jax: 0.10.0
libtpu: 0.0.40
codegen_flags: <defaults>
</compile_context>

<pallas_src>
import numpy as np
import jax
import jax.numpy as jnp
from jax.experimental import pallas as pl
from jax.experimental.pallas import tpu as pltpu

# ----------------------------- FSQ configuration -----------------------------
LEVELS = [8, 5, 5, 5]
NUM_CODEBOOKS = 2
LATENT_DIM = 4                          # assert latent_dim % len(levels) == 0
EFF_DIM = len(LEVELS) * NUM_CODEBOOKS   # effective codebook dim = 8 (project_in target)


def _fsq_constants():
    eps = 1e-3
    lv = np.array(LEVELS * NUM_CODEBOOKS, dtype=np.float32)      # (8,)
    half_l = (lv - 1.0) * (1.0 + eps) / 2.0
    offset = np.where(lv % 2 == 0, 0.5, 0.0).astype(np.float32)
    shift = np.arctanh(offset / half_l).astype(np.float32)
    half_width = (lv // 2).astype(np.float32)
    return (half_l[None, :], offset[None, :], shift[None, :], half_width[None, :])


HALF_L, OFFSET, SHIFT, HALF_WIDTH = _fsq_constants()

# fused parameter names, in kernel-argument order (after x)
FUSED_ORDER = [
    "half_l", "offset",
    "we1", "be1", "we2", "be2", "we3p", "be3p",
    "w1_o", "b1_o", "wo2", "bo2", "wo3", "bo3",
    "w1_a", "b1_a", "wa2", "ba2", "wa3", "ba3",
]


# ----------------------------- host-side weight fusion -----------------------
def fuse_params(params, input_dim, *, action_dtype=jnp.bfloat16):
    """Fold FSQ projections, scaling, slicing and concat bookkeeping into the weights.

    Lane layout used by the kernel: the input is padded to E = 8 + D lanes,
    lanes [0, 8) carry the (zero-initialised) FSQ code slots and lanes [8, E) carry x.
    Encoder / FSQ constants are padded so the code slots compute codes and the x slots
    compute exact zeros; `concat([codes, x])` then becomes `codes_pad + x_pad`.
    The decoder final layers are padded so both heads write disjoint lane ranges of one
    (out_dim = xc + action_dim) output block.  The action head is stored in
    `action_dtype` (bf16 by default, f32 accumulation in-kernel); everything feeding
    the FSQ round() and the obs head stays float32.
    """
    f32 = jnp.float32
    D = input_dim
    xc = D - 2
    action_dim = params["wa3"].shape[1]
    out_dim = xc + action_dim

    def zeros(*s):
        return jnp.zeros(s, f32)

    # FSQ per-lane constants, inert over the x lanes: tanh(0)*1 - 0 = 0 -> round -> 0
    half_l = jnp.concatenate([jnp.asarray(HALF_L), jnp.ones((1, D), f32)], axis=1)
    offset = jnp.concatenate([jnp.asarray(OFFSET), jnp.zeros((1, D), f32)], axis=1)

    # encoder: first 8 K-rows of layer-1 see the zero code-lanes of x_pad
    we1 = jnp.concatenate([zeros(EFF_DIM, params["we1"].shape[1]), params["we1"]], axis=0)
    # project_in + arctanh shift folded into encoder layer 3; lane-padded over x lanes
    we3p = params["we3"] @ params["wpi"]                                     # (h1, 8)
    be3p = params["be3"] @ params["wpi"] + params["bpi"] + jnp.asarray(SHIFT)
    we3p = jnp.concatenate([we3p, zeros(we3p.shape[0], D)], axis=1)          # (h1, E)
    be3p = jnp.concatenate([be3p, zeros(1, D)], axis=1)                      # (1, E)

    f = {
        "half_l": half_l, "offset": offset,
        "we1": we1, "be1": params["be1"],
        "we2": params["we2"], "be2": params["be2"],
        "we3p": we3p, "be3p": be3p,
        "dims": (D, xc, action_dim),
    }

    inv_hw = jnp.asarray(1.0 / HALF_WIDTH)          # (1, 8)
    wpo_scaled = params["wpo"] * inv_hw.T           # (8, 4): absorbs codes / half_width

    for p, dt in (("o", f32), ("a", action_dtype)):
        w1 = params[f"w{p}1"]                       # (4 + xc, hidden)
        hid = w1.shape[1]
        wq = wpo_scaled @ w1[:LATENT_DIM]                                    # (8, hidden)
        # x lanes: x[:, 1:-1] selection realised as zero rows for x[0] and x[-1]
        wx = jnp.zeros((D, hid), f32).at[1:D - 1].set(w1[LATENT_DIM:])       # (D, hidden)
        f[f"w1_{p}"] = jnp.concatenate([wq, wx], axis=0).astype(dt)          # (E, hidden)
        f[f"b1_{p}"] = (params["bpo"] @ w1[:LATENT_DIM] + params[f"b{p}1"]).astype(f32)
        f[f"w{p}2"] = params[f"w{p}2"].astype(dt)
        f[f"b{p}2"] = params[f"b{p}2"].astype(f32)

    # final layers: each head writes its own lane range of one out_dim-wide block
    f["wo3"] = jnp.concatenate([params["wo3"], zeros(params["wo3"].shape[0], action_dim)], axis=1)
    f["bo3"] = jnp.concatenate([params["bo3"], zeros(1, action_dim)], axis=1)
    f["wa3"] = jnp.concatenate([zeros(params["wa3"].shape[0], xc), params["wa3"]],
                               axis=1).astype(action_dtype)
    f["ba3"] = jnp.concatenate([zeros(1, xc), params["ba3"]], axis=1)
    return f


# --------------------------------- kernel ------------------------------------
def autoencoder_fsq_kernel(
    x_ref,                                   # (tb, E): lanes [0,8)=0, [8,E)=x
    half_l, offset,                          # (1, E)
    we1, be1, we2, be2, we3p, be3p,          # encoder (f32)
    w1_o, b1_o, wo2, bo2, wo3, bo3,          # obs head (f32)
    w1_a, b1_a, wa2, ba2, wa3, ba3,          # action head (bf16 weights, f32 biases)
    out_ref,                                 # (tb, xc + action_dim)
):
    f32 = jnp.float32
    xp = x_ref[...]                                                          # (tb, E)

    # ---- encoder MLP (project_in + arctanh shift folded into layer 3) ----
    h = jnp.maximum(jnp.dot(xp, we1[...], preferred_element_type=f32) + be1[...], 0.0)
    h = jnp.maximum(jnp.dot(h, we2[...], preferred_element_type=f32) + be2[...], 0.0)
    zp = jnp.dot(h, we3p[...], preferred_element_type=f32) + be3p[...]       # (tb, E)

    # ---- FSQ bound + round; x lanes stay exactly zero (tanh(0)*1 - 0 = 0) ----
    codes = jnp.round(jnp.tanh(zp) * half_l[...] - offset[...])              # (tb, E)

    # concat([codes, x_current]) realised as a single vector add (disjoint lanes);
    # scale 1/half_width, project_out and the x[:,1:-1] slice live in w1_* already.
    cx = codes + xp                                                          # (tb, E)

    # ---- obs head (float32) ----
    ho = jnp.maximum(jnp.dot(cx, w1_o[...], preferred_element_type=f32) + b1_o[...], 0.0)
    ho = jnp.maximum(jnp.dot(ho, wo2[...], preferred_element_type=f32) + bo2[...], 0.0)
    pred = jnp.dot(ho, wo3[...], preferred_element_type=f32) + bo3[...]      # act lanes = 0

    # ---- action head (bf16 weights/activations, f32 accumulation) ----
    adt = w1_a.dtype
    ha = jnp.maximum(
        jnp.dot(cx.astype(adt), w1_a[...], preferred_element_type=f32) + b1_a[...], 0.0)
    ha = jnp.maximum(
        jnp.dot(ha.astype(adt), wa2[...], preferred_element_type=f32) + ba2[...], 0.0)
    act = jnp.dot(ha.astype(adt), wa3[...], preferred_element_type=f32) + ba3[...]  # pred lanes = 0

    # single merged output block: [ pred_x | act ], one store / one output DMA stream
    out_ref[...] = pred + act


# ------------------------------- host wrapper ---------------------------------
def autoencoder_fsq_forward(x, fused, *, batch_tile=None):
    B, D = x.shape
    d_in, xc_dim, action_dim = fused["dims"]
    assert D == d_in
    out_dim = xc_dim + action_dim
    E = EFF_DIM + D

    # Batch tile: big tiles amortize the ~0.35 us/step pipeline overhead and the
    # per-tile weight-push latency of 9 small matmuls.  Live f32 temporaries are
    # dominated by the (tb, 256) action-head activations, so tb up to 4096 stays well
    # under a 48 MiB scoped-VMEM limit on v7x (64 MiB physical) and easily on v5e/v6e.
    # Bound by ceil(B/2) so the "parallel" axis always has >=2 steps (v7x megacore).
    if batch_tile is None:
        batch_tile = 4096
    half_b = -(-B // 2)
    tb = min(int(batch_tile), max(8, half_b))
    tb = max(8, ((tb + 7) // 8) * 8)            # f32 sublane multiple
    n_tiles = pl.cdiv(B, tb)
    b_pad = n_tiles * tb

    # lane-pad x with EFF_DIM zero code-lanes in front (+ batch padding)
    x_in = jnp.pad(x, ((0, b_pad - B), (EFF_DIM, 0)))

    weights = [fused[n] for n in FUSED_ORDER]
    vmem_limit = 48 * 1024 * 1024 if tb >= 1024 else None

    out = pl.pallas_call(
        autoencoder_fsq_kernel,
        grid=(n_tiles,),
        in_specs=[pl.BlockSpec((tb, E), lambda i: (i, 0))]
                 # full-shape blocks, constant index map -> weights stay resident
                 + [pl.BlockSpec(a.shape, lambda i: (0, 0)) for a in weights],
        out_specs=pl.BlockSpec((tb, out_dim), lambda i: (i, 0)),
        out_shape=jax.ShapeDtypeStruct((b_pad, out_dim), jnp.float32),
        compiler_params=pltpu.CompilerParams(
            dimension_semantics=("parallel",),
            vmem_limit_bytes=vmem_limit),
    )(x_in, *weights)

    out = out[:B]
    return out[:, :xc_dim], out[:, xc_dim:]


# ------------------------------ params & reference ----------------------------
def init_params(key, input_dim, action_dim, hidden_dims):
    d = input_dim
    xc_dim = d - 2
    shapes = {
        "we1": (d, hidden_dims[0]), "be1": (1, hidden_dims[0]),
        "we2": (hidden_dims[0], hidden_dims[1]), "be2": (1, hidden_dims[1]),
        "we3": (hidden_dims[1], LATENT_DIM), "be3": (1, LATENT_DIM),
        "wpi": (LATENT_DIM, EFF_DIM), "bpi": (1, EFF_DIM),
        "wpo": (EFF_DIM, LATENT_DIM), "bpo": (1, LATENT_DIM),
        "wo1": (LATENT_DIM + xc_dim, hidden_dims[0]), "bo1": (1, hidden_dims[0]),
        "wo2": (hidden_dims[0], hidden_dims[1]), "bo2": (1, hidden_dims[1]),
        "wo3": (hidden_dims[1], xc_dim), "bo3": (1, xc_dim),
        "wa1": (LATENT_DIM + xc_dim, 256), "ba1": (1, 256),
        "wa2": (256, 256), "ba2": (1, 256),
        "wa3": (256, action_dim), "ba3": (1, action_dim),
    }
    params = {}
    keys = jax.random.split(key, len(shapes))
    for name, sub in zip(shapes, keys):
        shp = shapes[name]
        scale = (1.0 / np.sqrt(shp[0])) if name.startswith("w") else 0.01
        params[name] = (scale * jax.random.normal(sub, shp)).astype(jnp.float32)
    return params


def reference_forward(x, params):
    """Pure-JAX reference with the original (unfused, float32) semantics."""
    relu = lambda v: jnp.maximum(v, 0.0)
    xc = x[:, 1:-1]
    h = relu(x @ params["we1"] + params["be1"])
    h = relu(h @ params["we2"] + params["be2"])
    z = h @ params["we3"] + params["be3"]
    zp = z @ params["wpi"] + params["bpi"]
    codes = jnp.round(jnp.tanh(zp + SHIFT) * HALF_L - OFFSET) / HALF_WIDTH
    vq = codes @ params["wpo"] + params["bpo"]
    dec_in = jnp.concatenate([vq, xc], axis=-1)

    def head(p):
        h0 = relu(dec_in @ params[f"w{p}1"] + params[f"b{p}1"])
        h1 = relu(h0 @ params[f"w{p}2"] + params[f"b{p}2"])
        return h1 @ params[f"w{p}3"] + params[f"b{p}3"]

    return head("o"), head("a")


if __name__ == "__main__":
    B, D, ACTION_DIM = 8, 16, 8
    HIDDEN_DIMS = [32, 32]

    key = jax.random.PRNGKey(0)
    kx, kp = jax.random.split(key)
    x = jax.random.normal(kx, (B, D), dtype=jnp.float32)
    params = init_params(kp, D, ACTION_DIM, HIDDEN_DIMS)
    fused = fuse_params(params, D)

    ref_pred_x, ref_act = reference_forward(x, params)

    # single-tile path
    pred_x, act = autoencoder_fsq_forward(x, fused)
    jax.block_until_ready((pred_x, act))
    assert pred_x.shape == (B, D - 2) and act.shape == (B, ACTION_DIM)
    np.testing.assert_allclose(np.asarray(pred_x), np.asarray(ref_pred_x),
                               rtol=1e-3, atol=1e-3)
    # action head runs with bf16 weights/activations (f32 accumulation) -> looser tol
    np.testing.assert_allclose(np.asarray(act), np.asarray(ref_act),
                               rtol=2e-2, atol=2e-2)

    # multi-tile (>=2 grid steps) + batch-padding path, built from the same rows
    x_big = jnp.concatenate([x, x, x[:4]], axis=0)                 # (20, D)
    pred_big, act_big = autoencoder_fsq_forward(x_big, fused)
    jax.block_until_ready((pred_big, act_big))
    ref_pred_big = jnp.concatenate([ref_pred_x, ref_pred_x, ref_pred_x[:4]], axis=0)
    ref_act_big = jnp.concatenate([ref_act, ref_act, ref_act[:4]], axis=0)
    np.testing.assert_allclose(np.asarray(pred_big), np.asarray(ref_pred_big),
                               rtol=1e-3, atol=1e-3)
    np.testing.assert_allclose(np.asarray(act_big), np.asarray(ref_act_big),
                               rtol=2e-2, atol=2e-2)

    print("KERNEL_OK")
</pallas_src>

<mosaic_0001>
module attributes {stable_mosaic.version = 11 : i64} {
  func.func @autoencoder_fsq_kernel(%arg0: i32, %arg1: memref<8x24xf32, #tpu.memory_space<vmem>>, %arg2: memref<1x24xf32, #tpu.memory_space<vmem>>, %arg3: memref<1x24xf32, #tpu.memory_space<vmem>>, %arg4: memref<24x32xf32, #tpu.memory_space<vmem>>, %arg5: memref<1x32xf32, #tpu.memory_space<vmem>>, %arg6: memref<32x32xf32, #tpu.memory_space<vmem>>, %arg7: memref<1x32xf32, #tpu.memory_space<vmem>>, %arg8: memref<32x24xf32, #tpu.memory_space<vmem>>, %arg9: memref<1x24xf32, #tpu.memory_space<vmem>>, %arg10: memref<24x32xf32, #tpu.memory_space<vmem>>, %arg11: memref<1x32xf32, #tpu.memory_space<vmem>>, %arg12: memref<32x32xf32, #tpu.memory_space<vmem>>, %arg13: memref<1x32xf32, #tpu.memory_space<vmem>>, %arg14: memref<32x22xf32, #tpu.memory_space<vmem>>, %arg15: memref<1x22xf32, #tpu.memory_space<vmem>>, %arg16: memref<24x256xbf16, #tpu.memory_space<vmem>>, %arg17: memref<1x256xf32, #tpu.memory_space<vmem>>, %arg18: memref<256x256xbf16, #tpu.memory_space<vmem>>, %arg19: memref<1x256xf32, #tpu.memory_space<vmem>>, %arg20: memref<256x22xbf16, #tpu.memory_space<vmem>>, %arg21: memref<1x22xf32, #tpu.memory_space<vmem>>, %arg22: memref<8x22xf32, #tpu.memory_space<vmem>>) attributes {dimension_semantics = [#tpu.dimension_semantics<parallel>], iteration_bounds = array<i64: 1>, scalar_prefetch = 0 : i64, scratch_operands = 0 : i64, tpu.core_type = #tpu.core_type<tc>, window_params = [{transform_indices = @transform_0, window_bounds = array<i64: 8, 24>}, {pipeline_mode = #tpu.pipeline_mode<synchronous>, transform_indices = @transform_1, window_bounds = array<i64: 1, 24>}, {pipeline_mode = #tpu.pipeline_mode<synchronous>, transform_indices = @transform_2, window_bounds = array<i64: 1, 24>}, {pipeline_mode = #tpu.pipeline_mode<synchronous>, transform_indices = @transform_3, window_bounds = array<i64: 24, 32>}, {pipeline_mode = #tpu.pipeline_mode<synchronous>, transform_indices = @transform_4, window_bounds = array<i64: 1, 32>}, {pipeline_mode = #tpu.pipeline_mode<synchronous>, transform_indices = @transform_5, window_bounds = array<i64: 32, 32>}, {pipeline_mode = #tpu.pipeline_mode<synchronous>, transform_indices = @transform_6, window_bounds = array<i64: 1, 32>}, {pipeline_mode = #tpu.pipeline_mode<synchronous>, transform_indices = @transform_7, window_bounds = array<i64: 32, 24>}, {pipeline_mode = #tpu.pipeline_mode<synchronous>, transform_indices = @transform_8, window_bounds = array<i64: 1, 24>}, {pipeline_mode = #tpu.pipeline_mode<synchronous>, transform_indices = @transform_9, window_bounds = array<i64: 24, 32>}, {pipeline_mode = #tpu.pipeline_mode<synchronous>, transform_indices = @transform_10, window_bounds = array<i64: 1, 32>}, {pipeline_mode = #tpu.pipeline_mode<synchronous>, transform_indices = @transform_11, window_bounds = array<i64: 32, 32>}, {pipeline_mode = #tpu.pipeline_mode<synchronous>, transform_indices = @transform_12, window_bounds = array<i64: 1, 32>}, {pipeline_mode = #tpu.pipeline_mode<synchronous>, transform_indices = @transform_13, window_bounds = array<i64: 32, 22>}, {pipeline_mode = #tpu.pipeline_mode<synchronous>, transform_indices = @transform_14, window_bounds = array<i64: 1, 22>}, {pipeline_mode = #tpu.pipeline_mode<synchronous>, transform_indices = @transform_15, window_bounds = array<i64: 24, 256>}, {pipeline_mode = #tpu.pipeline_mode<synchronous>, transform_indices = @transform_16, window_bounds = array<i64: 1, 256>}, {pipeline_mode = #tpu.pipeline_mode<synchronous>, transform_indices = @transform_17, window_bounds = array<i64: 256, 256>}, {pipeline_mode = #tpu.pipeline_mode<synchronous>, transform_indices = @transform_18, window_bounds = array<i64: 1, 256>}, {pipeline_mode = #tpu.pipeline_mode<synchronous>, transform_indices = @transform_19, window_bounds = array<i64: 256, 22>}, {pipeline_mode = #tpu.pipeline_mode<synchronous>, transform_indices = @transform_20, window_bounds = array<i64: 1, 22>}, {transform_indices = @transform_21, window_bounds = array<i64: 8, 22>}]} {
    %c0 = arith.constant 0 : index
    %c0_0 = arith.constant 0 : index
    %0 = vector.load %arg1[%c0, %c0_0] : memref<8x24xf32, #tpu.memory_space<vmem>>, vector<8x24xf32>
    %c0_1 = arith.constant 0 : index
    %c0_2 = arith.constant 0 : index
    %1 = vector.load %arg4[%c0_1, %c0_2] : memref<24x32xf32, #tpu.memory_space<vmem>>, vector<24x32xf32>
    %cst = arith.constant dense<0.000000e+00> : vector<8x32xf32>
    %2 = tpu.matmul %0, %1, %cst {dimension_numbers = #tpu.dot_dimension_numbers<[1], [0], [0], [1], [0, 0, 1, 1], [], []>} : vector<8x24xf32>, vector<24x32xf32>, vector<8x32xf32> -> vector<8x32xf32>
    %c0_3 = arith.constant 0 : index
    %c0_4 = arith.constant 0 : index
    %3 = vector.load %arg5[%c0_3, %c0_4] : memref<1x32xf32, #tpu.memory_space<vmem>>, vector<1x32xf32>
    %4 = vector.broadcast %3 : vector<1x32xf32> to vector<8x32xf32>
    %5 = arith.addf %2, %4 : vector<8x32xf32>
    %cst_5 = arith.constant 0.000000e+00 : f32
    %6 = vector.broadcast %cst_5 : f32 to vector<8x32xf32>
    %7 = arith.maximumf %5, %6 : vector<8x32xf32>
    %c0_6 = arith.constant 0 : index
    %c0_7 = arith.constant 0 : index
    %8 = vector.load %arg6[%c0_6, %c0_7] : memref<32x32xf32, #tpu.memory_space<vmem>>, vector<32x32xf32>
    %cst_8 = arith.constant dense<0.000000e+00> : vector<8x32xf32>
    %9 = tpu.matmul %7, %8, %cst_8 {dimension_numbers = #tpu.dot_dimension_numbers<[1], [0], [0], [1], [0, 0, 1, 1], [], []>} : vector<8x32xf32>, vector<32x32xf32>, vector<8x32xf32> -> vector<8x32xf32>
    %c0_9 = arith.constant 0 : index
    %c0_10 = arith.constant 0 : index
    %10 = vector.load %arg7[%c0_9, %c0_10] : memref<1x32xf32, #tpu.memory_space<vmem>>, vector<1x32xf32>
    %11 = vector.broadcast %10 : vector<1x32xf32> to vector<8x32xf32>
    %12 = arith.addf %9, %11 : vector<8x32xf32>
    %cst_11 = arith.constant 0.000000e+00 : f32
    %13 = vector.broadcast %cst_11 : f32 to vector<8x32xf32>
    %14 = arith.maximumf %12, %13 : vector<8x32xf32>
    %c0_12 = arith.constant 0 : index
    %c0_13 = arith.constant 0 : index
    %15 = vector.load %arg8[%c0_12, %c0_13] : memref<32x24xf32, #tpu.memory_space<vmem>>, vector<32x24xf32>
    %cst_14 = arith.constant dense<0.000000e+00> : vector<8x24xf32>
    %16 = tpu.matmul %14, %15, %cst_14 {dimension_numbers = #tpu.dot_dimension_numbers<[1], [0], [0], [1], [0, 0, 1, 1], [], []>} : vector<8x32xf32>, vector<32x24xf32>, vector<8x24xf32> -> vector<8x24xf32>
    %c0_15 = arith.constant 0 : index
    %c0_16 = arith.constant 0 : index
    %17 = vector.load %arg9[%c0_15, %c0_16] : memref<1x24xf32, #tpu.memory_space<vmem>>, vector<1x24xf32>
    %18 = vector.broadcast %17 : vector<1x24xf32> to vector<8x24xf32>
    %19 = arith.addf %16, %18 : vector<8x24xf32>
    %20 = math.tanh %19 : vector<8x24xf32>
    %c0_17 = arith.constant 0 : index
    %c0_18 = arith.constant 0 : index
    %21 = vector.load %arg2[%c0_17, %c0_18] : memref<1x24xf32, #tpu.memory_space<vmem>>, vector<1x24xf32>
    %22 = vector.broadcast %21 : vector<1x24xf32> to vector<8x24xf32>
    %23 = arith.mulf %20, %22 : vector<8x24xf32>
    %c0_19 = arith.constant 0 : index
    %c0_20 = arith.constant 0 : index
    %24 = vector.load %arg3[%c0_19, %c0_20] : memref<1x24xf32, #tpu.memory_space<vmem>>, vector<1x24xf32>
    %25 = vector.broadcast %24 : vector<1x24xf32> to vector<8x24xf32>
    %26 = arith.subf %23, %25 : vector<8x24xf32>
    %27 = math.roundeven %26 : vector<8x24xf32>
    %28 = arith.addf %27, %0 : vector<8x24xf32>
    %c0_21 = arith.constant 0 : index
    %c0_22 = arith.constant 0 : index
    %29 = vector.load %arg10[%c0_21, %c0_22] : memref<24x32xf32, #tpu.memory_space<vmem>>, vector<24x32xf32>
    %cst_23 = arith.constant dense<0.000000e+00> : vector<8x32xf32>
    %30 = tpu.matmul %28, %29, %cst_23 {dimension_numbers = #tpu.dot_dimension_numbers<[1], [0], [0], [1], [0, 0, 1, 1], [], []>} : vector<8x24xf32>, vector<24x32xf32>, vector<8x32xf32> -> vector<8x32xf32>
    %c0_24 = arith.constant 0 : index
    %c0_25 = arith.constant 0 : index
    %31 = vector.load %arg11[%c0_24, %c0_25] : memref<1x32xf32, #tpu.memory_space<vmem>>, vector<1x32xf32>
    %32 = vector.broadcast %31 : vector<1x32xf32> to vector<8x32xf32>
    %33 = arith.addf %30, %32 : vector<8x32xf32>
    %cst_26 = arith.constant 0.000000e+00 : f32
    %34 = vector.broadcast %cst_26 : f32 to vector<8x32xf32>
    %35 = arith.maximumf %33, %34 : vector<8x32xf32>
    %c0_27 = arith.constant 0 : index
    %c0_28 = arith.constant 0 : index
    %36 = vector.load %arg12[%c0_27, %c0_28] : memref<32x32xf32, #tpu.memory_space<vmem>>, vector<32x32xf32>
    %cst_29 = arith.constant dense<0.000000e+00> : vector<8x32xf32>
    %37 = tpu.matmul %35, %36, %cst_29 {dimension_numbers = #tpu.dot_dimension_numbers<[1], [0], [0], [1], [0, 0, 1, 1], [], []>} : vector<8x32xf32>, vector<32x32xf32>, vector<8x32xf32> -> vector<8x32xf32>
    %c0_30 = arith.constant 0 : index
    %c0_31 = arith.constant 0 : index
    %38 = vector.load %arg13[%c0_30, %c0_31] : memref<1x32xf32, #tpu.memory_space<vmem>>, vector<1x32xf32>
    %39 = vector.broadcast %38 : vector<1x32xf32> to vector<8x32xf32>
    %40 = arith.addf %37, %39 : vector<8x32xf32>
    %cst_32 = arith.constant 0.000000e+00 : f32
    %41 = vector.broadcast %cst_32 : f32 to vector<8x32xf32>
    %42 = arith.maximumf %40, %41 : vector<8x32xf32>
    %c0_33 = arith.constant 0 : index
    %c0_34 = arith.constant 0 : index
    %43 = vector.load %arg14[%c0_33, %c0_34] : memref<32x22xf32, #tpu.memory_space<vmem>>, vector<32x22xf32>
    %cst_35 = arith.constant dense<0.000000e+00> : vector<8x22xf32>
    %44 = tpu.matmul %42, %43, %cst_35 {dimension_numbers = #tpu.dot_dimension_numbers<[1], [0], [0], [1], [0, 0, 1, 1], [], []>} : vector<8x32xf32>, vector<32x22xf32>, vector<8x22xf32> -> vector<8x22xf32>
    %c0_36 = arith.constant 0 : index
    %c0_37 = arith.constant 0 : index
    %45 = vector.load %arg15[%c0_36, %c0_37] : memref<1x22xf32, #tpu.memory_space<vmem>>, vector<1x22xf32>
    %46 = vector.broadcast %45 : vector<1x22xf32> to vector<8x22xf32>
    %47 = arith.addf %44, %46 : vector<8x22xf32>
    %48 = arith.truncf %28 : vector<8x24xf32> to vector<8x24xbf16>
    %c0_38 = arith.constant 0 : index
    %c0_39 = arith.constant 0 : index
    %49 = vector.load %arg16[%c0_38, %c0_39] : memref<24x256xbf16, #tpu.memory_space<vmem>>, vector<24x256xbf16>
    %cst_40 = arith.constant dense<0.000000e+00> : vector<8x256xf32>
    %50 = tpu.matmul %48, %49, %cst_40 {dimension_numbers = #tpu.dot_dimension_numbers<[1], [0], [0], [1], [0, 0, 1, 1], [], []>} : vector<8x24xbf16>, vector<24x256xbf16>, vector<8x256xf32> -> vector<8x256xf32>
    %c0_41 = arith.constant 0 : index
    %c0_42 = arith.constant 0 : index
    %51 = vector.load %arg17[%c0_41, %c0_42] : memref<1x256xf32, #tpu.memory_space<vmem>>, vector<1x256xf32>
    %52 = vector.broadcast %51 : vector<1x256xf32> to vector<8x256xf32>
    %53 = arith.addf %50, %52 : vector<8x256xf32>
    %cst_43 = arith.constant 0.000000e+00 : f32
    %54 = vector.broadcast %cst_43 : f32 to vector<8x256xf32>
    %55 = arith.maximumf %53, %54 : vector<8x256xf32>
    %56 = arith.truncf %55 : vector<8x256xf32> to vector<8x256xbf16>
    %c0_44 = arith.constant 0 : index
    %c0_45 = arith.constant 0 : index
    %57 = vector.load %arg18[%c0_44, %c0_45] : memref<256x256xbf16, #tpu.memory_space<vmem>>, vector<256x256xbf16>
    %cst_46 = arith.constant dense<0.000000e+00> : vector<8x256xf32>
    %58 = tpu.matmul %56, %57, %cst_46 {dimension_numbers = #tpu.dot_dimension_numbers<[1], [0], [0], [1], [0, 0, 1, 1], [], []>} : vector<8x256xbf16>, vector<256x256xbf16>, vector<8x256xf32> -> vector<8x256xf32>
    %c0_47 = arith.constant 0 : index
    %c0_48 = arith.constant 0 : index
    %59 = vector.load %arg19[%c0_47, %c0_48] : memref<1x256xf32, #tpu.memory_space<vmem>>, vector<1x256xf32>
    %60 = vector.broadcast %59 : vector<1x256xf32> to vector<8x256xf32>
    %61 = arith.addf %58, %60 : vector<8x256xf32>
    %cst_49 = arith.constant 0.000000e+00 : f32
    %62 = vector.broadcast %cst_49 : f32 to vector<8x256xf32>
    %63 = arith.maximumf %61, %62 : vector<8x256xf32>
    %64 = arith.truncf %63 : vector<8x256xf32> to vector<8x256xbf16>
    %c0_50 = arith.constant 0 : index
    %c0_51 = arith.constant 0 : index
    %65 = vector.load %arg20[%c0_50, %c0_51] : memref<256x22xbf16, #tpu.memory_space<vmem>>, vector<256x22xbf16>
    %cst_52 = arith.constant dense<0.000000e+00> : vector<8x22xf32>
    %66 = tpu.matmul %64, %65, %cst_52 {dimension_numbers = #tpu.dot_dimension_numbers<[1], [0], [0], [1], [0, 0, 1, 1], [], []>} : vector<8x256xbf16>, vector<256x22xbf16>, vector<8x22xf32> -> vector<8x22xf32>
    %c0_53 = arith.constant 0 : index
    %c0_54 = arith.constant 0 : index
    %67 = vector.load %arg21[%c0_53, %c0_54] : memref<1x22xf32, #tpu.memory_space<vmem>>, vector<1x22xf32>
    %68 = vector.broadcast %67 : vector<1x22xf32> to vector<8x22xf32>
    %69 = arith.addf %66, %68 : vector<8x22xf32>
    %70 = arith.addf %47, %69 : vector<8x22xf32>
    %c0_55 = arith.constant 0 : index
    %c0_56 = arith.constant 0 : index
    %71 = vector.load %arg22[%c0_55, %c0_56] : memref<8x22xf32, #tpu.memory_space<vmem>>, vector<8x22xf32>
    tpu.vector_store %arg22[%c0_55, %c0_56], %70 {strides = array<i32>} : memref<8x22xf32, #tpu.memory_space<vmem>>, vector<8x22xf32>,
    return
  }
  func.func @transform_0(%arg0: i32) -> (i32, i32) {
    %c0_i32 = arith.constant 0 : i32
    %c0_i32_0 = arith.constant 0 : i32
    return %arg0, %c0_i32 : i32, i32
  }
  func.func @transform_1(%arg0: i32) -> (i32, i32) {
    %c0_i32 = arith.constant 0 : i32
    %c0_i32_0 = arith.constant 0 : i32
    %c0_i32_1 = arith.constant 0 : i32
    return %c0_i32, %c0_i32_0 : i32, i32
  }
  func.func @transform_2(%arg0: i32) -> (i32, i32) {
    %c0_i32 = arith.constant 0 : i32
    %c0_i32_0 = arith.constant 0 : i32
    %c0_i32_1 = arith.constant 0 : i32
    return %c0_i32, %c0_i32_0 : i32, i32
  }
  func.func @transform_3(%arg0: i32) -> (i32, i32) {
    %c0_i32 = arith.constant 0 : i32
    %c0_i32_0 = arith.constant 0 : i32
    %c0_i32_1 = arith.constant 0 : i32
    return %c0_i32, %c0_i32_0 : i32, i32
  }
  func.func @transform_4(%arg0: i32) -> (i32, i32) {
    %c0_i32 = arith.constant 0 : i32
    %c0_i32_0 = arith.constant 0 : i32
    %c0_i32_1 = arith.constant 0 : i32
    return %c0_i32, %c0_i32_0 : i32, i32
  }
  func.func @transform_5(%arg0: i32) -> (i32, i32) {
    %c0_i32 = arith.constant 0 : i32
    %c0_i32_0 = arith.constant 0 : i32
    %c0_i32_1 = arith.constant 0 : i32
    return %c0_i32, %c0_i32_0 : i32, i32
  }
  func.func @transform_6(%arg0: i32) -> (i32, i32) {
    %c0_i32 = arith.constant 0 : i32
    %c0_i32_0 = arith.constant 0 : i32
    %c0_i32_1 = arith.constant 0 : i32
    return %c0_i32, %c0_i32_0 : i32, i32
  }
  func.func @transform_7(%arg0: i32) -> (i32, i32) {
    %c0_i32 = arith.constant 0 : i32
    %c0_i32_0 = arith.constant 0 : i32
    %c0_i32_1 = arith.constant 0 : i32
    return %c0_i32, %c0_i32_0 : i32, i32
  }
  func.func @transform_8(%arg0: i32) -> (i32, i32) {
    %c0_i32 = arith.constant 0 : i32
    %c0_i32_0 = arith.constant 0 : i32
    %c0_i32_1 = arith.constant 0 : i32
    return %c0_i32, %c0_i32_0 : i32, i32
  }
  func.func @transform_9(%arg0: i32) -> (i32, i32) {
    %c0_i32 = arith.constant 0 : i32
    %c0_i32_0 = arith.constant 0 : i32
    %c0_i32_1 = arith.constant 0 : i32
    return %c0_i32, %c0_i32_0 : i32, i32
  }
  func.func @transform_10(%arg0: i32) -> (i32, i32) {
    %c0_i32 = arith.constant 0 : i32
    %c0_i32_0 = arith.constant 0 : i32
    %c0_i32_1 = arith.constant 0 : i32
    return %c0_i32, %c0_i32_0 : i32, i32
  }
  func.func @transform_11(%arg0: i32) -> (i32, i32) {
    %c0_i32 = arith.constant 0 : i32
    %c0_i32_0 = arith.constant 0 : i32
    %c0_i32_1 = arith.constant 0 : i32
    return %c0_i32, %c0_i32_0 : i32, i32
  }
  func.func @transform_12(%arg0: i32) -> (i32, i32) {
    %c0_i32 = arith.constant 0 : i32
    %c0_i32_0 = arith.constant 0 : i32
    %c0_i32_1 = arith.constant 0 : i32
    return %c0_i32, %c0_i32_0 : i32, i32
  }
  func.func @transform_13(%arg0: i32) -> (i32, i32) {
    %c0_i32 = arith.constant 0 : i32
    %c0_i32_0 = arith.constant 0 : i32
    %c0_i32_1 = arith.constant 0 : i32
    return %c0_i32, %c0_i32_0 : i32, i32
  }
  func.func @transform_14(%arg0: i32) -> (i32, i32) {
    %c0_i32 = arith.constant 0 : i32
    %c0_i32_0 = arith.constant 0 : i32
    %c0_i32_1 = arith.constant 0 : i32
    return %c0_i32, %c0_i32_0 : i32, i32
  }
  func.func @transform_15(%arg0: i32) -> (i32, i32) {
    %c0_i32 = arith.constant 0 : i32
    %c0_i32_0 = arith.constant 0 : i32
    %c0_i32_1 = arith.constant 0 : i32
    return %c0_i32, %c0_i32_0 : i32, i32
  }
  func.func @transform_16(%arg0: i32) -> (i32, i32) {
    %c0_i32 = arith.constant 0 : i32
    %c0_i32_0 = arith.constant 0 : i32
    %c0_i32_1 = arith.constant 0 : i32
    return %c0_i32, %c0_i32_0 : i32, i32
  }
  func.func @transform_17(%arg0: i32) -> (i32, i32) {
    %c0_i32 = arith.constant 0 : i32
    %c0_i32_0 = arith.constant 0 : i32
    %c0_i32_1 = arith.constant 0 : i32
    return %c0_i32, %c0_i32_0 : i32, i32
  }
  func.func @transform_18(%arg0: i32) -> (i32, i32) {
    %c0_i32 = arith.constant 0 : i32
    %c0_i32_0 = arith.constant 0 : i32
    %c0_i32_1 = arith.constant 0 : i32
    return %c0_i32, %c0_i32_0 : i32, i32
  }
  func.func @transform_19(%arg0: i32) -> (i32, i32) {
    %c0_i32 = arith.constant 0 : i32
    %c0_i32_0 = arith.constant 0 : i32
    %c0_i32_1 = arith.constant 0 : i32
    return %c0_i32, %c0_i32_0 : i32, i32
  }
  func.func @transform_20(%arg0: i32) -> (i32, i32) {
    %c0_i32 = arith.constant 0 : i32
    %c0_i32_0 = arith.constant 0 : i32
    %c0_i32_1 = arith.constant 0 : i32
    return %c0_i32, %c0_i32_0 : i32, i32
  }
  func.func @transform_21(%arg0: i32) -> (i32, i32) {
    %c0_i32 = arith.constant 0 : i32
    %c0_i32_0 = arith.constant 0 : i32
    return %arg0, %c0_i32 : i32, i32
  }
}

</mosaic_0001>

<bundles_post_ra>
// kernel: tpu_custom_call.1
= control target key start
LH: loop header
LB: loop body
LE: loop exit
PB: predicated region body
PF: predicated region fallthrough
CT: control target
= control target key end

     0   :  { %s1427_s0 = inlined_call_operand.vmem [shape: f32[8,24], index: 0, kind: input, shape index: {}]   ;;  %s1428_s1 = inlined_call_operand.vmem [shape: f32[1,24], index: 1, kind: input, shape index: {}]   ;;  %s1429_s2 = inlined_call_operand.vmem [shape: f32[1,24], index: 2, kind: input, shape index: {}]   ;;  %s1430_s3 = inlined_call_operand.vmem [shape: f32[24,32], index: 3, kind: input, shape index: {}]   ;;  %s1431_s4 = inlined_call_operand.vmem [shape: f32[1,32], index: 4, kind: input, shape index: {}]   ;;  %s1432_s5 = inlined_call_operand.vmem [shape: f32[32,32], index: 5, kind: input, shape index: {}]   ;;  %s1433_s6 = inlined_call_operand.vmem [shape: f32[1,32], index: 6, kind: input, shape index: {}]   ;;  %s1434_s7 = inlined_call_operand.vmem [shape: f32[32,24], index: 7, kind: input, shape index: {}]   ;;  %s1435_s8 = inlined_call_operand.vmem [shape: f32[1,24], index: 8, kind: input, shape index: {}]   ;;  %s1436_s9 = inlined_call_operand.vmem [shape: f32[24,32], index: 9, kind: input, shape index: {}]   ;;  %s1437_s10 = inlined_call_operand.vmem [shape: f32[1,32], index: 10, kind: input, shape index: {}]   ;;  %s1438_s11 = inlined_call_operand.vmem [shape: f32[32,32], index: 11, kind: input, shape index: {}]   ;;  %s1439_s12 = inlined_call_operand.vmem [shape: f32[1,32], index: 12, kind: input, shape index: {}]   ;;  %s1440_s13 = inlined_call_operand.vmem [shape: f32[32,22], index: 13, kind: input, shape index: {}]   ;;  %s1441_s14 = inlined_call_operand.vmem [shape: f32[1,22], index: 14, kind: input, shape index: {}]   ;;  %s1442_s15 = inlined_call_operand.vmem [shape: bf16[24,256], index: 15, kind: input, shape index: {}]   ;;  %s1443_s16 = inlined_call_operand.vmem [shape: f32[1,256], index: 16, kind: input, shape index: {}]   ;;  %s1444_s17 = inlined_call_operand.hbm [shape: bf16[256,256], index: 17, kind: input, shape index: {}]   ;;  %s1445_s18 = inlined_call_operand.vmem [shape: f32[1,256], index: 18, kind: input, shape index: {}]   ;;  %s1446_s19 = inlined_call_operand.vmem [shape: bf16[256,22], index: 19, kind: input, shape index: {}]   ;;  %s1447_s20 = inlined_call_operand.vmem [shape: f32[1,22], index: 20, kind: input, shape index: {}]   ;;  %s1448_s21 = inlined_call_operand.hbm [shape: f32[8,22], index: 21, kind: output, shape index: {}]  }
   0x1   :  { %1451 = sst [smem:[#allocation8_spill]] %s1427_s0 }
   0x2   :  { %1452 = sst [smem:[#allocation9_spill]] %s1428_s1 }
   0x3   :  { %1453 = sst [smem:[#allocation10_spill]] %s1429_s2 }
   0x4   :  { %1454 = sst [smem:[#allocation11_spill]] %s1430_s3 }
   0x5   :  { %1455 = sst [smem:[#allocation12_spill]] %s1431_s4 }
   0x6   :  { %1456 = sst [smem:[#allocation13_spill]] %s1432_s5 }
   0x7   :  { %26 = vsyncpa [#allocation3], 0 }
   0x8   :  { %27 = vsyncpa [#allocation4], 0  ;;  %s66_s26 = sshll.u32 %s1444_s17, 4  ;;  %s1120_s27 = smov [#allocation2]   ;;  %s67_s26 = int_to_ptr.hbm [resolvable:$true] %s66_s26 }
   0x9   :  { %s68_s3 = sshll.u32 %s1120_s27, 4  ;;  %s1121_s28 = smov 128   ;;  %s69_s3 = int_to_ptr.vmem [resolvable:$true] %s68_s3 }
   0xa   :  { %s1122_s29 = smov 8  }
   0xb   :  { %74 = dma.hbm_to_vmem [thread:$0]  %s67_s26, 4096, %s69_s3, [#allocation3], %s1121_s28, %s1121_s28, %s1122_s29  }
   0xc   :  { %1116 = dma.done.wait [#allocation3], 4096  }
   0xd   :  { %1117 = vsyncadd [#allocation3], 4294963200  ;;  %s1457_s30 = sld [smem:[#allocation11_spill]]  ;;  %vm94_vm0 = vcmask 195584   ;;  %v155_v8 = vld [vmem:[%s1434_s7 + $0x18] sm:$0xff]  ;;  %vm127_vm1 = vcmask 261120  }
   0xe   :  { %s1458_s2 = sld [smem:[#allocation8_spill]]  ;;  %175 = vmatpush.msra.mxu2 %v155_v8  ;;  %v154_v13 = vld [vmem:[%s1434_s7 + $0x10] sm:$0xff]  ;;  %v153_v14 = vld [vmem:[%s1434_s7 + $0x8] sm:$0xff]  ;;  %v152_v15 = vld [vmem:[%s1434_s7] sm:$0xff]  ;;  %vm318_vm3 = vcmask 1043456   ;;  %vm768_vm4 = vcmask 179200  }
   0xf   :  { %s1459_s27 = sld [smem:[#allocation13_spill]]  ;;  %v1058_v16 = vld [vmem:[%s1433_s6] ss:$0 sm:$0xff]  ;;  %v198_v20 = vld [vmem:[%s1436_s9 + $0x10] sm:$0xff]  ;;  %v197_v21 = vld [vmem:[%s1436_s9 + $0x8] sm:$0xff] }
  0x10   :  { %s1460_s1 = sld [smem:[#allocation12_spill]]  ;;  %176 = vmatpush.msra.mxu2 %v154_v13  ;;  %v196_v22 = vld [vmem:[%s1436_s9] sm:$0xff]  ;;  %v230_v23 = vld [vmem:[%s1438_s11 + $0x18] sm:$0xff]  ;;  %v229_v24 = vld [vmem:[%s1438_s11 + $0x10] sm:$0xff] }
  0x11   :  { %v1059_v25 = vld [vmem:[%s1435_s8] ss:$0 sm:$0xff]  ;;  %s1461_s26 = sld [smem:[#allocation9_spill]]  ;;  %v1310_v41 = vld [vmem:[%s1442_s15 + $0x10] sm:$0xff]  ;;  %v228_v42 = vld [vmem:[%s1438_s11 + $0x8] sm:$0xff] }
  0x12   :  { %177 = vmatpush.msra.mxu2 %v153_v14  ;;  %s1462_s28 = sld [smem:[#allocation10_spill]]  ;;  %v307_v43 = vunpack.c.l.b16 %v1310_v41  ;;  %v227_v44 = vld [vmem:[%s1438_s11] sm:$0xff]  ;;  %v996_v48 = vld [vmem:[%s1442_s15 + $0x4] sm:$0xf0]  ;;  %v861_v50 = vld [vmem:[#allocation2 + $0x70] sm:$0xf] }
  0x13   :  { %v89_v0 = vld [vmem:[%s1457_s30 + $0x10] sm:$0xff]  ;;  %v88_v1 = vld [vmem:[%s1457_s30 + $0x8] sm:$0xff]  ;;  %v87_v2 = vld [vmem:[%s1457_s30] sm:$0xff] }
  0x14   :  { %111 = vmatpush.msra.mxu1 %v89_v0  ;;  %v86_v3 = vld [vmem:[%s1458_s2] sm:$0xff]  ;;  %178 = vmatpush.msra.mxu2 %v152_v15  ;;  %v311_v45 = vpack.c.b16 %v307_v43, %v307_v43  ;;  %v1012_v51 = vld [vmem:[#allocation2 + $0x74] sm:$0xf0]  ;;  %v1010_v54 = vld [vmem:[#allocation2 + $0x64] sm:$0xf0] }
  0x15   :  { %v122_v4 = vld [vmem:[%s1459_s27 + $0x18] sm:$0xff]  ;;  %v121_v5 = vld [vmem:[%s1459_s27 + $0x10] sm:$0xff]  ;;  %v120_v6 = vld [vmem:[%s1459_s27 + $0x8] sm:$0xff]  ;;  %v862_v52 = vor.u32 %v1012_v51, %v861_v50 }
  0x16   :  { %112 = vmatpush.msra.mxu1 %v88_v1  ;;  %v119_v7 = vld [vmem:[%s1459_s27] sm:$0xff]  ;;  %219 = vmatpush.msrb.mxu2 %v198_v20  ;;  %v320_v46 = vsel %vm318_vm3, %v311_v45, 0  ;;  %v845_v56 = vld [vmem:[#allocation2 + $0x50] sm:$0xf]  ;;  %v1008_v57 = vld [vmem:[#allocation2 + $0x54] sm:$0xf0] }
  0x17   :  { %v1057_v9 = vld [vmem:[%s1460_s1] ss:$0 sm:$0xff]  ;;  %553 = vmatpush.bf16.msra.mxu0 %v862_v52  ;;  %v262_v58 = vld [vmem:[%s1440_s13 + $0x18] sm:$0xff]  ;;  %v261_v59 = vld [vmem:[%s1440_s13 + $0x10] sm:$0xff]  ;;  %v846_v60 = vor.u32 %v1008_v57, %v845_v56  ;;  %s1123_s1 = smov [#allocation5]  }
  0x18   :  { %113 = vmatpush.msra.mxu1 %v87_v2  ;;  %220 = vmatpush.msrb.mxu2 %v197_v21  ;;  %v1060_v28 = vld [vmem:[%s1461_s26] ss:$0 sm:$0xff]  ;;  %v1006_v62 = vld [vmem:[#allocation2 + $0x44] sm:$0xf0]  ;;  %v1011_v1 = vld [vmem:[#allocation2 + $0x74] sm:$0xf] }
  0x19   :  { %787 = vmatmul.msk.f32.vlgmr.msra.gmra.mxu1 %vm94_vm0, %v86_v3  ;;  %v1061_v29 = vld [vmem:[%s1462_s28] ss:$0 sm:$0xff]  ;;  %v863_v2 = vld [vmem:[#allocation2 + $0x78] sm:$0xf0]  ;;  %v855_v8 = vld [vmem:[#allocation2 + $0x68] sm:$0xf0] }
  0x1a   :  { %143 = vmatpush.msrb.mxu1 %v122_v4  ;;  %221 = vmatpush.msrb.mxu2 %v196_v22  ;;  %v795_v47 = vld [vmem:[%s1442_s15] sm:$0xf]  ;;  %v1005_v14 = vld [vmem:[#allocation2 + $0x44] sm:$0xf]  ;;  %v839_v15 = vld [vmem:[#allocation2 + $0x48] sm:$0xf0] }
  0x1b   :  { %v796_v49 = vor.u32 %v996_v48, %v795_v47  ;;  %v853_v53 = vld [vmem:[#allocation2 + $0x60] sm:$0xf]  ;;  %v831_v21 = vld [vmem:[#allocation2 + $0x38] sm:$0xf0]  ;;  %v997_v45 = vld [vmem:[#allocation2 + $0x4] sm:$0xf] }
  0x1c   :  { %144 = vmatpush.msrb.mxu1 %v121_v5  ;;  %v854_v55 = vor.u32 %v1010_v54, %v853_v53  ;;  %v837_v61 = vld [vmem:[#allocation2 + $0x40] sm:$0xf]  ;;  %v866_v5 = vor.u32 %v1011_v1, %v863_v2  ;;  %v807_v47 = vld [vmem:[#allocation2 + $0x8] sm:$0xf0]  ;;  %v1028_v50 = vld [vmem:[#allocation2 + $0xf4] sm:$0xf0] }
  0x1d   :  { %v838_v63 = vor.u32 %v1006_v62, %v837_v61  ;;  %v1062_v0 = vld [vmem:[%s1437_s10] ss:$0 sm:$0xff]  ;;  %v810_v48 = vor.u32 %v997_v45, %v807_v47  ;;  %v1026_v53 = vld [vmem:[#allocation2 + $0xe4] sm:$0xf0]  ;;  %v1024_v56 = vld [vmem:[#allocation2 + $0xd4] sm:$0xf0] }
  0x1e   :  { %145 = vmatpush.msrb.mxu1 %v120_v6  ;;  %554 = vmatpush.bf16.msra.mxu0 %v854_v55  ;;  %v805_v43 = vld [vmem:[#allocation2] sm:$0xf]  ;;  %v909_v55 = vld [vmem:[#allocation2 + $0xd0] sm:$0xf]  ;;  %v1027_v62 = vld [vmem:[#allocation2 + $0xf4] sm:$0xf] }
  0x1f   :  { %v917_v52 = vld [vmem:[#allocation2 + $0xe0] sm:$0xf]  ;;  %v910_v57 = vor.u32 %v1024_v56, %v909_v55  ;;  %v1044_v45 = vld [vmem:[%s1446_s19 + $0x78] sm:$0xff]  ;;  %v1043_v47 = vld [vmem:[%s1446_s19 + $0x70] sm:$0xff]  ;;  %s775_s24 = sshll.u32 %s1123_s1, 4  ;;  %s777_s10 = sshll.u32 %s1448_s21, 4  ;;  %s776_s24 = int_to_ptr.vmem [resolvable:$true] %s775_s24  ;;  %s778_s10 = int_to_ptr.hbm [resolvable:$true] %s777_s10 }
  0x20   :  { %146 = vmatpush.msrb.mxu1 %v119_v7  ;;  %v1009_v7 = vld [vmem:[#allocation2 + $0x64] sm:$0xf]  ;;  %v918_v54 = vor.u32 %v1026_v53, %v917_v52  ;;  %v1063_v61 = vld [vmem:[%s1439_s12] ss:$0 sm:$0xff]  ;;  %v1032_v52 = vld [vmem:[%s1446_s19 + $0x18] sm:$0xff] }
  0x21   :  { %v1360_v2 = vld [vmem:[%s1443_s16] sm:$0x3]  ;;  %v1040_v53 = vld [vmem:[%s1446_s19 + $0x58] sm:$0xff]  ;;  %v1031_v55 = vld [vmem:[%s1446_s19 + $0x10] sm:$0xff] }
  0x22   :  { %250 = vmatpush.msra.mxu1 %v230_v23  ;;  %555 = vmatpush.bf16.msra.mxu0 %v846_v60  ;;  %v260_v23 = vld [vmem:[%s1440_s13 + $0x8] sm:$0xff]  ;;  %v1039_v56 = vld [vmem:[%s1446_s19 + $0x50] sm:$0xff] }
  0x24   :  { %251 = vmatpush.msra.mxu1 %v229_v24  ;;  %v821_v24 = vld [vmem:[#allocation2 + $0x20] sm:$0xf] }
  0x26   :  { %252 = vmatpush.msra.mxu1 %v228_v42  ;;  %556 = vmatpush.bf16.msra.mxu0 %v838_v63  ;;  %v927_v63 = vld [vmem:[#allocation2 + $0xf8] sm:$0xf0] }
  0x28   :  { %253 = vmatpush.msra.mxu1 %v227_v44  ;;  %v998_v44 = vld [vmem:[#allocation2 + $0x4] sm:$0xf0] }
  0x96   :  { %v115_v10 = vpop.f32.mrf.mxu1 }
  0x97   :  { %v116_v11 = vadd.f32 %v1057_v9, %v115_v10  ;;  %v858_v9 = vor.u32 %v1009_v7, %v855_v8  ;;  %v1007_v10 = vld [vmem:[#allocation2 + $0x54] sm:$0xf]  ;;  %v296_v7 = vperm.slane %v1360_v2, 0 }
  0x99   :  { %v118_v12 = vmax.f32 %v116_v11, 0.0  ;;  %v847_v11 = vld [vmem:[#allocation2 + $0x58] sm:$0xf0] }
  0x9b   :  { %788 = vmatmul.msk.f32.vlgmr.msrb.gmra.mxu1 %vm127_vm1, %v118_v12  ;;  %v850_v12 = vor.u32 %v1007_v10, %v847_v11  ;;  %v911_v10 = vld [vmem:[#allocation2 + $0xd8] sm:$0xf0] }
  0x9c   :  { %331 = vmatpush.bf16.msrb.mxu1 %v320_v46  ;;  %v806_v46 = vor.u32 %v998_v44, %v805_v43  ;;  %v1036_v44 = vld [vmem:[%s1446_s19 + $0x38] sm:$0xff] }
  0xa0   :  { %332 = vmatpush.bf16.msrb.mxu1 %v796_v49  ;;  %v925_v49 = vld [vmem:[#allocation2 + $0xf0] sm:$0xf] }
  0xa1   :  { %v926_v51 = vor.u32 %v1028_v50, %v925_v49  ;;  %v1042_v49 = vld [vmem:[%s1446_s19 + $0x68] sm:$0xff]  ;;  %v1033_v50 = vld [vmem:[%s1446_s19 + $0x20] sm:$0xff] }
  0xa3   :  { %566 = vmatpush.bf16.msra.mxu3 %v926_v51  ;;  %v1041_v51 = vld [vmem:[%s1446_s19 + $0x60] sm:$0xff] }
  0xa7   :  { %567 = vmatpush.bf16.msra.mxu3 %v918_v54 }
  0xab   :  { %568 = vmatpush.bf16.msra.mxu3 %v910_v57 }
 0x118   :  { %v148_v17 = vpop.f32.mrf.mxu1 }
 0x119   :  { %v149_v18 = vadd.f32 %v1058_v16, %v148_v17  ;;  %v842_v16 = vor.u32 %v1005_v14, %v839_v15  ;;  %v829_v17 = vld [vmem:[#allocation2 + $0x30] sm:$0xf] }
 0x11b   :  { %v151_v19 = vmax.f32 %v149_v18, 0.0  ;;  %v1004_v18 = vld [vmem:[#allocation2 + $0x34] sm:$0xf0] }
 0x11c   :  { %v830_v20 = vor.u32 %v1004_v18, %v829_v17  ;;  %v903_v17 = vld [vmem:[#allocation2 + $0xc8] sm:$0xf0] }
 0x11d   :  { %789 = vmatmul.msk.f32.vlgmr.msra.gmra.mxu2 %vm127_vm1, %v151_v19  ;;  %v1003_v19 = vld [vmem:[#allocation2 + $0x34] sm:$0xf] }
 0x11e   :  { %282 = vmatpush.msra.mxu2 %v262_v58  ;;  %v834_v22 = vor.u32 %v1003_v19, %v831_v21  ;;  %557 = vmatpush.bf16.msra.mxu0 %v830_v20  ;;  %v901_v58 = vld [vmem:[#allocation2 + $0xc0] sm:$0xf]  ;;  %v893_v21 = vld [vmem:[#allocation2 + $0xb0] sm:$0xf] }
 0x120   :  { %283 = vmatpush.msra.mxu2 %v261_v59  ;;  %v1022_v59 = vld [vmem:[#allocation2 + $0xc4] sm:$0xf0] }
 0x121   :  { %v902_v60 = vor.u32 %v1022_v59, %v901_v58  ;;  %v297_v59 = vperm.slane %v1360_v2, 1  ;;  %v1029_v2 = vld [vmem:[%s1446_s19] sm:$0xff] }
 0x122   :  { %284 = vmatpush.msra.mxu2 %v260_v23  ;;  %v1019_v23 = vld [vmem:[#allocation2 + $0xb4] sm:$0xf] }
 0x123   :  { %569 = vmatpush.bf16.msra.mxu3 %v902_v60 }
 0x1a0   :  { %v180_v26 = vpop.f32.mrf.mxu2 }
 0x1a1   :  { %v181_v27 = vadd.f32 %v1059_v25, %v180_v26  ;;  %v1002_v25 = vld [vmem:[#allocation2 + $0x24] sm:$0xf0]  ;;  %v308_v26 = vunpack.c.h.b16 %v1310_v41 }
 0x1a3   :  { %1066 = vtanh.f32 %v181_v27  ;;  %v822_v27 = vor.u32 %v1002_v25, %v821_v24  ;;  %v895_v25 = vld [vmem:[#allocation2 + $0xb8] sm:$0xf0] }
 0x1a5   :  { %558 = vmatpush.bf16.msra.mxu0 %v822_v27  ;;  %v885_v27 = vld [vmem:[#allocation2 + $0xa0] sm:$0xf] }
 0x1a9   :  { %v1067_v30 = vpop.eup %1066 }
 0x1aa   :  { %v188_v31 = vmul.f32 %v1067_v30, %v1060_v28  ;;  %v1001_v28 = vld [vmem:[#allocation2 + $0x24] sm:$0xf] }
 0x1ab   :  { %v259_v30 = vld [vmem:[%s1440_s13] sm:$0xff] }
 0x1ac   :  { %v193_v32 = vsub.f32 %v188_v31, %v1061_v29  ;;  %v823_v29 = vld [vmem:[#allocation2 + $0x28] sm:$0xf0]  ;;  %285 = vmatpush.msra.mxu2 %v259_v30  ;;  %v1017_v30 = vld [vmem:[#allocation2 + $0xa4] sm:$0xf] }
 0x1ad   :  { %v826_v31 = vor.u32 %v1001_v28, %v823_v29  ;;  %v1018_v28 = vld [vmem:[#allocation2 + $0xa4] sm:$0xf0] }
 0x1ae   :  { %v1047_v33 = vcvt.f32.s32 %v193_v32  ;;  %v1045_v35 = vand.u32 2147483647, %v193_v32  ;;  %v1050_v37 = vand.u32 2147483648, %v193_v32  ;;  %v886_v29 = vor.u32 %v1018_v28, %v885_v27 }
 0x1b0   :  { %v1048_v34 = vcvt.s32.f32 %v1047_v33  ;;  %vm1046_vm2 = vcmp.lt.f32.partialorder %v1045_v35, 8388608.0  ;;  %v1000_v35 = vld [vmem:[#allocation2 + $0x14] sm:$0xf0] }
 0x1b2   :  { %v1049_v36 = vand.u32 2147483647, %v1048_v34  ;;  %v813_v34 = vld [vmem:[#allocation2 + $0x10] sm:$0xf] }
 0x1b4   :  { %v1051_v38 = vor.u32 %v1050_v37, %v1049_v36  ;;  %v999_v36 = vld [vmem:[#allocation2 + $0x14] sm:$0xf]  ;;  %v814_v37 = vor.u32 %v1000_v35, %v813_v34 }
 0x1b5   :  { %v1015_v35 = vld [vmem:[#allocation2 + $0x94] sm:$0xf] }
 0x1b6   :  { %v1052_v39 = vsel %vm1046_vm2, %v1051_v38, %v193_v32  ;;  %v312_v32 = vpack.c.b16 %v308_v26, %v308_v26  ;;  %v815_v38 = vld [vmem:[#allocation2 + $0x18] sm:$0xf0]  ;;  %559 = vmatpush.bf16.msra.mxu0 %v814_v37  ;;  %v898_v26 = vor.u32 %v1019_v23, %v895_v25  ;;  %v1064_v25 = vld [vmem:[%s1441_s14] ss:$0 sm:$0xff] }
 0x1b7   :  { %v195_v40 = vadd.f32 %v1052_v39, %v86_v3  ;;  %v995_v39 = vld [vmem:[%s1442_s15 + $0x4] sm:$0xf]  ;;  %v818_v41 = vor.u32 %v999_v36, %v815_v38  ;;  %v879_v36 = vld [vmem:[#allocation2 + $0x98] sm:$0xf0]  ;;  %v869_v38 = vld [vmem:[#allocation2 + $0x80] sm:$0xf] }
 0x1b8   :  { %v323_v33 = vsel %vm318_vm3, %v312_v32, 0  ;;  %v877_v32 = vld [vmem:[#allocation2 + $0x90] sm:$0xf]  ;;  %v882_v37 = vor.u32 %v1015_v35, %v879_v36 }
 0x1b9   :  { %790 = vmatmul.msk.f32.vlgmr.msrb.gmra.mxu2 %vm94_vm0, %v195_v40  ;;  %v1336_v13 = vpack.c.bf16 %v195_v40, %v195_v40  ;;  %v797_v40 = vld [vmem:[%s1442_s15 + $0x8] sm:$0xf0] }
 0x1ba   :  { %344 = vmatpush.bf16.msrb.mxu2 %v323_v33  ;;  %v800_v42 = vor.u32 %v995_v39, %v797_v40  ;;  %560 = vmatpush.bf16.msra.mxu0 %v806_v46  ;;  %v1016_v33 = vld [vmem:[#allocation2 + $0x94] sm:$0xf0]  ;;  %v1014_v39 = vld [vmem:[#allocation2 + $0x84] sm:$0xf0]  ;;  %v1013_v40 = vld [vmem:[#allocation2 + $0x84] sm:$0xf] }
 0x1bb   :  { %v878_v34 = vor.u32 %v1016_v33, %v877_v32  ;;  %v1035_v46 = vld [vmem:[%s1446_s19 + $0x30] sm:$0xff] }
 0x1be   :  { %345 = vmatpush.bf16.msrb.mxu2 %v800_v42  ;;  %v871_v42 = vld [vmem:[#allocation2 + $0x88] sm:$0xf0]  ;;  %741 = vmatpush.bf16.msrb.mxu0 %v1036_v44 }
 0x1bf   :  { %v874_v43 = vor.u32 %v1013_v40, %v871_v42 }
 0x1c2   :  { %742 = vmatpush.bf16.msrb.mxu0 %v1035_v46 }
 0x23c   :  { %v223_v3 = vpop.f32.mrf.mxu2 }
 0x23d   :  { %v224_v4 = vadd.f32 %v1062_v0, %v223_v3  ;;  %v930_v3 = vor.u32 %v1027_v62, %v927_v63 }
 0x23f   :  { %v226_v6 = vmax.f32 %v224_v4, 0.0 }
 0x241   :  { %791 = vmatmul.msk.f32.vlgmr.msra.gmra.mxu1 %vm127_vm1, %v226_v6  ;;  %v919_v6 = vld [vmem:[#allocation2 + $0xe8] sm:$0xf0] }
 0x242   :  { %579 = vmatpush.bf16.msra.mxu1 %v866_v5  ;;  %v1025_v5 = vld [vmem:[#allocation2 + $0xe4] sm:$0xf] }
 0x243   :  { %v922_v8 = vor.u32 %v1025_v5, %v919_v6  ;;  %v1038_v5 = vld [vmem:[%s1446_s19 + $0x48] sm:$0xff]  ;;  %v1037_v6 = vld [vmem:[%s1446_s19 + $0x40] sm:$0xff] }
 0x246   :  { %580 = vmatpush.bf16.msra.mxu1 %v858_v9  ;;  %v1023_v9 = vld [vmem:[#allocation2 + $0xd4] sm:$0xf] }
 0x247   :  { %v914_v14 = vor.u32 %v1023_v9, %v911_v10 }
 0x249   :  { %801 = vmatmul.msk.bf16.vlgmr.msrb.gmra.mxu1 %vm94_vm0, %v1336_v13 }
 0x24a   :  { %581 = vmatpush.bf16.msra.mxu1 %v850_v12 }
 0x24e   :  { %582 = vmatpush.bf16.msra.mxu1 %v842_v16  ;;  %v1021_v16 = vld [vmem:[#allocation2 + $0xc4] sm:$0xf] }
 0x24f   :  { %v906_v19 = vor.u32 %v1021_v16, %v903_v17 }
 0x252   :  { %583 = vmatpush.bf16.msra.mxu1 %v834_v22  ;;  %v1020_v22 = vld [vmem:[#allocation2 + $0xb4] sm:$0xf0] }
 0x253   :  { %v894_v24 = vor.u32 %v1020_v22, %v893_v21 }
 0x255   :  { %570 = vmatpush.bf16.msra.mxu3 %v894_v24  ;;  %v1065_v24 = vld [vmem:[%s1447_s20] ss:$0 sm:$0xff] }
 0x256   :  { %584 = vmatpush.bf16.msra.mxu1 %v826_v31 }
 0x259   :  { %571 = vmatpush.bf16.msra.mxu3 %v886_v29 }
 0x25a   :  { %585 = vmatpush.bf16.msra.mxu1 %v818_v41  ;;  %v870_v41 = vor.u32 %v1014_v39, %v869_v38 }
 0x25d   :  { %572 = vmatpush.bf16.msra.mxu3 %v878_v34 }
 0x25e   :  { %586 = vmatpush.bf16.msra.mxu1 %v810_v48  ;;  %v1034_v48 = vld [vmem:[%s1446_s19 + $0x28] sm:$0xff] }
 0x25f   :  { %743 = vmatpush.bf16.msrb.mxu0 %v1034_v48 }
 0x261   :  { %573 = vmatpush.bf16.msra.mxu3 %v870_v41 }
 0x263   :  { %744 = vmatpush.bf16.msrb.mxu0 %v1033_v50 }
 0x265   :  { %754 = vmatpush.bf16.msrb.mxu3 %v1044_v45 }
 0x267   :  { %745 = vmatpush.bf16.msrb.mxu0 %v1032_v52 }
 0x269   :  { %755 = vmatpush.bf16.msrb.mxu3 %v1043_v47 }
 0x26b   :  { %746 = vmatpush.bf16.msrb.mxu0 %v1031_v55 }
 0x26d   :  { %756 = vmatpush.bf16.msrb.mxu3 %v1042_v49 }
 0x271   :  { %757 = vmatpush.bf16.msrb.mxu3 %v1041_v51 }
 0x275   :  { %758 = vmatpush.bf16.msrb.mxu3 %v1040_v53 }
 0x279   :  { %759 = vmatpush.bf16.msrb.mxu3 %v1039_v56 }
 0x27d   :  { %760 = vmatpush.bf16.msrb.mxu3 %v1038_v5 }
 0x281   :  { %761 = vmatpush.bf16.msrb.mxu3 %v1037_v6 }
 0x2be   :  { %v255_v0 = vpop.f32.mrf.mxu1 }
 0x2bf   :  { %v256_v1 = vadd.f32 %v1063_v61, %v255_v0 }
 0x2c1   :  { %v258_v4 = vmax.f32 %v256_v1, 0.0 }
 0x2c3   :  { %792 = vmatmul.msk.f32.vlgmr.msra.gmra.mxu2 %vm127_vm1, %v258_v4  ;;  %v1030_v4 = vld [vmem:[%s1446_s19 + $0x8] sm:$0xff] }
 0x2c4   :  { %592 = vmatpush.bf16.msra.mxu2 %v930_v3  ;;  %747 = vmatpush.bf16.msrb.mxu0 %v1030_v4 }
 0x2c6   :  { %v334_v11 = vpop.f32.mrf.mxu1 }
 0x2c7   :  { %v335_v12 = vadd.f32 %v334_v11, %v296_v7  ;;  %v387_v7 = vld [vmem:[%s1445_s18] sm:$0x3] }
 0x2c8   :  { %593 = vmatpush.bf16.msra.mxu2 %v922_v8  ;;  %748 = vmatpush.bf16.msrb.mxu0 %v1029_v2  ;;  %v389_v8 = vperm.slane %v387_v7, 0  ;;  %v390_v9 = vperm.slane %v387_v7, 1 }
 0x2c9   :  { %v351_v15 = vmax.f32 %v335_v12, 0.0 }
 0x2cb   :  { %802 = vmatmul.msk.bf16.vlgmr.msrb.gmra.mxu2 %vm94_vm0, %v1336_v13  ;;  %v353_v18 = vpack.c.bf16 %v351_v15, %v351_v15  ;;  %v887_v13 = vld [vmem:[#allocation2 + $0xa8] sm:$0xf0] }
 0x2cc   :  { %594 = vmatpush.bf16.msra.mxu2 %v914_v14  ;;  %v890_v31 = vor.u32 %v1017_v30, %v887_v13 }
 0x2cd   :  { %561 = vmatmul.bf16.vlgmr.msra.gmra.mxu0 %v353_v18  ;;  %587 = vmatmul.bf16.vlgmr.msra.gmra.mxu1 %v353_v18 }
 0x2ce   :  { %v336_v20 = vpop.f32.mrf.mxu1 }
 0x2d0   :  { %595 = vmatpush.bf16.msra.mxu2 %v906_v19 }
 0x2d4   :  { %596 = vmatpush.bf16.msra.mxu2 %v898_v26 }
 0x2d8   :  { %597 = vmatpush.bf16.msra.mxu2 %v890_v31 }
 0x2dc   :  { %598 = vmatpush.bf16.msra.mxu2 %v882_v37 }
 0x2e0   :  { %599 = vmatpush.bf16.msra.mxu2 %v874_v43 }
 0x346   :  { %v287_v54 = vpop.f32.mrf.mxu2 }
 0x347   :  { %v288_v28 = vadd.f32 %v1064_v25, %v287_v54 }
 0x34a   :  { %v562_v57 = vpop.f32.mrf.mxu0  ;;  %v588_v58 = vpop.f32.mrf.mxu1 }
 0x34b   :  { %v563_v10 = vadd.f32 %v562_v57, %v389_v8  ;;  %v589_v11 = vadd.f32 %v588_v58, %v390_v9 }
 0x34e   :  { %v347_v60 = vpop.f32.mrf.mxu2 }
 0x34f   :  { %v348_v61 = vadd.f32 %v347_v60, %v297_v59 }
 0x351   :  { %v352_v62 = vmax.f32 %v348_v61, 0.0 }
 0x352   :  { %v564_v63 = vpop.f32.mrf.mxu0  ;;  %v590_v0 = vpop.f32.mrf.mxu1 }
 0x353   :  { %v354_v1 = vpack.c.bf16 %v352_v62, %v352_v62 }
 0x355   :  { %574 = vmatmul.bf16.vlgmr.msra.gmra.mxu3 %v354_v1  ;;  %600 = vmatmul.bf16.vlgmr.msra.gmra.mxu2 %v354_v1 }
 0x356   :  { %v349_v3 = vpop.f32.mrf.mxu2 }
 0x3d8   :  { %v575_v12 = vpop.f32.mrf.mxu3  ;;  %v601_v14 = vpop.f32.mrf.mxu2 }
 0x3d9   :  { %v576_v15 = vadd.f32 %v575_v12, %v563_v10  ;;  %v602_v16 = vadd.f32 %v601_v14, %v589_v11 }
 0x3db   :  { %v605_v17 = vmax.f32 %v576_v15, 0.0  ;;  %v606_v18 = vmax.f32 %v602_v16, 0.0 }
 0x3dd   :  { %v607_v19 = vpack.c.bf16 %v605_v17, %v605_v17  ;;  %v608_v20 = vpack.c.bf16 %v606_v18, %v606_v18 }
 0x3df   :  { %749 = vmatmul.bf16.vlgmr.msrb.gmra.mxu0 %v607_v19  ;;  %762 = vmatmul.bf16.vlgmr.msrb.gmra.mxu3 %v608_v20 }
 0x3e0   :  { %v577_v21 = vpop.f32.mrf.mxu3  ;;  %v603_v22 = vpop.f32.mrf.mxu2 }
 0x45c   :  { %v750_v23 = vpop.f32.mrf.mxu0 }
 0x45d   :  { %v751_v26 = vadd.f32 %v1065_v24, %v750_v23 }
 0x462   :  { %v763_v27 = vpop.f32.mrf.mxu3 }
 0x463   :  { %v764_v29 = vadd.f32 %v763_v27, %v751_v26 }
 0x464   :  { %v752_v30 = vpop.f32.mrf.mxu0 }
 0x465   :  { %v767_v13 = vadd.f32 %v764_v29, %v288_v28 }
 0x467   :  { %769 = vst.msk [vmem:[#allocation5] sm:$0xff] %vm768_vm4, %v767_v13 }
 0x468   :  { %780 = dma.vmem_to_hbm [thread:$0]  %s776_s24, 128, %s778_s10, [#allocation4]  }
 0x46a   :  { %v765_v31 = vpop.f32.mrf.mxu3 }
 0x46b   :  { %1118 = dma.done.wait [#allocation4], 128  }
 0x46c   :  { %1119 = vsyncadd [#allocation4], 4294967168 }
 0x46d   :  { %785 = vsyncpa [#allocation3], 1 }
 0x46e   :  { %786 = vsyncpa [#allocation4], 1 }

</bundles_post_ra>
